<compile_context>
chip_gen: v7x
topology: tpu7x:2x2x1
jax: 0.10.0
libtpu: 0.0.40
codegen_flags: <defaults>
</compile_context>

<pallas_src>
import jax
import jax.numpy as jnp
from jax.experimental import pallas as pl
from jax.experimental.pallas import tpu as pltpu

_MIB = 1024 * 1024


def _round_up(x, m):
    return ((x + m - 1) // m) * m


def _round_down(x, m):
    return (x // m) * m


def _vmem_capacity_bytes():
    """Physical VMEM per core; conservative 64 MiB (v7x per-TC) fallback."""
    try:
        info = pltpu.get_tpu_info()
        cap = int(getattr(info, "vmem_capacity_bytes", 0) or 0)
        if cap > 0:
            return cap
    except Exception:
        pass
    return 64 * _MIB


def _normalize_kernel(x_ref, predict_ref, reli_ref):
    x = x_ref[...].astype(jnp.float32)            # (TM, C)
    C = x.shape[-1]

    # Row-wise min / max (single pass each over the block).
    row_max = jnp.max(x, axis=-1, keepdims=True)  # (TM, 1)
    row_min = jnp.min(x, axis=-1, keepdims=True)  # (TM, 1)

    # argmax (first occurrence) -> one-hot, fully vectorized on the VPU/XLU.
    col = jax.lax.broadcasted_iota(jnp.int32, x.shape, 1)            # (TM, C)
    is_max = x == row_max
    argmax_idx = jnp.min(jnp.where(is_max, col, C), axis=-1, keepdims=True)
    onehot = col == argmax_idx                                       # bool (TM, C)

    # tmp_reli = (x - min) / (max(x - min) + 0.001)
    #          = (x - min) * (1 / (row_max - row_min + 0.001))
    # One exact reciprocal per ROW (TM values) instead of a per-element f32
    # divide keeps the VALU/EUP slots nearly idle so compute hides under DMA.
    denom = (row_max - row_min) + jnp.float32(0.001)                 # (TM, 1)
    inv = pl.reciprocal(denom, approx=False)                         # exact
    tmp = (x - row_min) * inv

    reli = jnp.abs(jnp.float32(1.0) - onehot.astype(jnp.float32) - tmp)

    predict_ref[...] = onehot.astype(predict_ref.dtype)
    reli_ref[...] = reli.astype(reli_ref.dtype)


def normalize(pro_pred: jax.Array, *, predict_dtype=jnp.int8,
              reli_dtype=jnp.float32, target_step_in_bytes=None):
    """Pallas implementation of the `Normalize` module forward.

    Args:
      pro_pred: float array of shape [N, C].
      predict_dtype: dtype for the one-hot output (int8 default to cut HBM
        write traffic; PyTorch's one_hot returns int64 — cast downstream if
        int64 semantics are needed).
      reli_dtype: dtype for reli (float32 default; bf16 saves ~22% of HBM
        traffic if the caller's tolerances allow).
      target_step_in_bytes: HBM input bytes per grid step (auto if None).
    Returns:
      (predict, reli): predict one-hot 0/1 [N, C]; reli [N, C].
    """
    N, C = pro_pred.shape
    in_b = jnp.dtype(pro_pred.dtype).itemsize
    pred_b = jnp.dtype(predict_dtype).itemsize
    reli_b = jnp.dtype(reli_dtype).itemsize

    # Lane-padding-aware VMEM footprint: for C < 128 each row still occupies a
    # full 128 lanes in VMEM for the input and BOTH outputs.
    lanes = _round_up(C, 128)
    vmem_row = lanes * (in_b + pred_b + reli_b)
    hbm_in_row = C * in_b

    cap = _vmem_capacity_bytes()
    # Double-buffered working-set budget (input block + both output blocks,
    # x2 pipeline buffers): ~24 MiB on v7x (64 MiB physical VMEM), up to
    # ~56 MiB on v5e/v6e (128 MiB physical).
    ws_budget = max(16 * _MIB, min(cap // 2 - 8 * _MIB, 56 * _MIB))

    if target_step_in_bytes is None:
        # ~4 MiB of HBM input per grid step amortizes the ~0.35 us per-step
        # pipeline overhead (>85% of roofline); aim higher on v7x-class chips
        # (64 MiB VMEM, ~3.2 TB/s) where each MiB moves in well under 1 us.
        target_step_in_bytes = 8 * _MIB if cap <= 64 * _MIB else 4 * _MIB

    if N < 64:
        # Single full-extent block: always layout-legal; too few rows to be
        # worth splitting across TensorCores.
        tile = N
    else:
        t_target = target_step_in_bytes // max(hbm_in_row, 1)
        t_vmem = ws_budget // (2 * vmem_row)              # double-buffered
        t_twostep = _round_up(pl.cdiv(N, 2), 32)          # >= 2 grid steps (v7x)
        tile = max(32, _round_down(min(t_target, t_vmem, t_twostep), 32))

    grid = (pl.cdiv(N, tile),)    # partial tail block is fine: rows are
                                  # independent; OOB writes are dropped.

    # TODO(synk): for C < 128 a caller-side lane-dense fold (N,C)->(N//k, 128)
    # would remove masked partial stores, but needs vetted in-kernel segmented
    # reductions (Mosaic reshape / roll cost) and an N % k tail path; the
    # padding-aware VMEM sizing above already removes the OOM/spill risk.

    row_spec = pl.BlockSpec((tile, C), lambda i: (i, 0))

    ws = 2 * tile * vmem_row
    vmem_limit = int(min(cap - 8 * _MIB,
                         max(16 * _MIB, int(ws * 1.25) + 2 * _MIB)))

    cost = pl.CostEstimate(
        flops=8 * N * C,
        transcendentals=0,
        bytes_accessed=N * C * (in_b + pred_b + reli_b),
    )

    predict, reli = pl.pallas_call(
        _normalize_kernel,
        out_shape=(
            jax.ShapeDtypeStruct((N, C), predict_dtype),
            jax.ShapeDtypeStruct((N, C), reli_dtype),
        ),
        grid_spec=pltpu.PrefetchScalarGridSpec(
            num_scalar_prefetch=0,
            grid=grid,
            in_specs=[row_spec],
            out_specs=[
                pl.BlockSpec((tile, C), lambda i: (i, 0)),
                pl.BlockSpec((tile, C), lambda i: (i, 0)),
            ],
        ),
        compiler_params=pltpu.CompilerParams(
            dimension_semantics=("parallel",),
            vmem_limit_bytes=vmem_limit,
        ),
        cost_estimate=cost,
    )(pro_pred)
    return predict, reli


def _reference(pro_pred):
    """Pure-JAX reference mirroring the PyTorch forward."""
    tmp_pro = jnp.argmax(pro_pred, axis=-1)
    predict = jax.nn.one_hot(tmp_pro, pro_pred.shape[-1], dtype=jnp.int32)
    tmp_reli = pro_pred - jnp.min(pro_pred, axis=-1, keepdims=True)
    tmp_reli = tmp_reli / (jnp.max(tmp_reli, axis=-1, keepdims=True) + 0.001)
    reli = jnp.abs(1.0 - predict - tmp_reli)
    return predict, reli


if __name__ == "__main__":
    key = jax.random.PRNGKey(0)

    # Small shape consistent with the module: [N, C] logits.
    N, C = 16, 32
    pro_pred = jax.random.normal(key, (N, C), dtype=jnp.float32)
    predict, reli = normalize(pro_pred)
    jax.block_until_ready((predict, reli))
    ref_predict, ref_reli = _reference(pro_pred)
    assert predict.shape == (N, C) and reli.shape == (N, C)
    assert jnp.array_equal(predict.astype(jnp.int32), ref_predict)
    assert jnp.allclose(reli, ref_reli, atol=2e-6, rtol=2e-6)

    # Multi-step grid with a non-divisible tail (also exercises the >=2-step
    # split so both v7x TensorCores get work).
    N2, C2 = 1000, 64
    x2 = jax.random.normal(jax.random.PRNGKey(1), (N2, C2), dtype=jnp.float32)
    p2, r2 = normalize(x2)
    jax.block_until_ready((p2, r2))
    rp2, rr2 = _reference(x2)
    assert jnp.array_equal(p2.astype(jnp.int32), rp2)
    assert jnp.allclose(r2, rr2, atol=2e-6, rtol=2e-6)

    # Lane-aligned class dimension (C a multiple of 128).
    N3, C3 = 200, 256
    x3 = jax.random.normal(jax.random.PRNGKey(2), (N3, C3), dtype=jnp.float32)
    p3, r3 = normalize(x3)
    jax.block_until_ready((p3, r3))
    rp3, rr3 = _reference(x3)
    assert jnp.array_equal(p3.astype(jnp.int32), rp3)
    assert jnp.allclose(r3, rr3, atol=2e-6, rtol=2e-6)

    print("KERNEL_OK")
</pallas_src>

<mosaic_0001>
module attributes {stable_mosaic.version = 11 : i64} {
  func.func @_normalize_kernel(%arg0: i32, %arg1: memref<16x32xf32, #tpu.memory_space<vmem>>, %arg2: memref<16x32xi8, #tpu.memory_space<vmem>>, %arg3: memref<16x32xf32, #tpu.memory_space<vmem>>) attributes {dimension_semantics = [#tpu.dimension_semantics<parallel>], iteration_bounds = array<i64: 1>, scalar_prefetch = 0 : i64, scratch_operands = 0 : i64, tpu.core_type = #tpu.core_type<tc>, window_params = [{transform_indices = @transform_0, window_bounds = array<i64: 16, 32>}, {transform_indices = @transform_1, window_bounds = array<i64: 16, 32>}, {transform_indices = @transform_2, window_bounds = array<i64: 16, 32>}]} {
    %c0 = arith.constant 0 : index
    %c0_0 = arith.constant 0 : index
    %0 = vector.load %arg1[%c0, %c0_0] : memref<16x32xf32, #tpu.memory_space<vmem>>, vector<16x32xf32>
    %cst = arith.constant dense<0xFF800000> : vector<16xf32>
    %1 = vector.multi_reduction <maximumf>, %0, %cst [1] : vector<16x32xf32> to vector<16xf32>
    %2 = vector.shape_cast %1 : vector<16xf32> to vector<16x1xf32>
    %cst_1 = arith.constant dense<0x7F800000> : vector<16xf32>
    %3 = vector.multi_reduction <minimumf>, %0, %cst_1 [1] : vector<16x32xf32> to vector<16xf32>
    %4 = vector.shape_cast %3 : vector<16xf32> to vector<16x1xf32>
    %5 = tpu.iota {dimensions = array<i32: 1>} : vector<16x32xi32>
    %6 = vector.broadcast %2 : vector<16x1xf32> to vector<16x32xf32>
    %7 = arith.cmpf oeq, %0, %6 : vector<16x32xf32>
    %c32_i32 = arith.constant 32 : i32
    %8 = vector.broadcast %c32_i32 : i32 to vector<16x32xi32>
    %9 = arith.select %7, %5, %8 : vector<16x32xi1>, vector<16x32xi32>
    %cst_2 = arith.constant dense<2147483647> : vector<16xi32>
    %10 = vector.multi_reduction <minsi>, %9, %cst_2 [1] : vector<16x32xi32> to vector<16xi32>
    %11 = vector.shape_cast %10 : vector<16xi32> to vector<16x1xi32>
    %12 = vector.broadcast %11 : vector<16x1xi32> to vector<16x32xi32>
    %13 = arith.cmpi eq, %5, %12 : vector<16x32xi32>
    %14 = arith.subf %2, %4 : vector<16x1xf32>
    %cst_3 = arith.constant 1.000000e-03 : f32
    %15 = vector.broadcast %cst_3 : f32 to vector<16x1xf32>
    %16 = arith.addf %14, %15 : vector<16x1xf32>
    %17 = tpu.reciprocal %16 : vector<16x1xf32> -> vector<16x1xf32>
    %18 = vector.broadcast %4 : vector<16x1xf32> to vector<16x32xf32>
    %19 = arith.subf %0, %18 : vector<16x32xf32>
    %20 = vector.broadcast %17 : vector<16x1xf32> to vector<16x32xf32>
    %21 = arith.mulf %19, %20 : vector<16x32xf32>
    %22 = arith.extui %13 : vector<16x32xi1> to vector<16x32xi32>
    %23 = arith.sitofp %22 : vector<16x32xi32> to vector<16x32xf32>
    %cst_4 = arith.constant 1.000000e+00 : f32
    %24 = vector.broadcast %cst_4 : f32 to vector<16x32xf32>
    %25 = arith.subf %24, %23 : vector<16x32xf32>
    %26 = arith.subf %25, %21 : vector<16x32xf32>
    %27 = math.absf %26 : vector<16x32xf32>
    %28 = arith.extui %13 : vector<16x32xi1> to vector<16x32xi8>
    %c0_5 = arith.constant 0 : index
    %c0_6 = arith.constant 0 : index
    %29 = vector.load %arg2[%c0_5, %c0_6] : memref<16x32xi8, #tpu.memory_space<vmem>>, vector<16x32xi8>
    tpu.vector_store %arg2[%c0_5, %c0_6], %28 {strides = array<i32>} : memref<16x32xi8, #tpu.memory_space<vmem>>, vector<16x32xi8>,
    %c0_7 = arith.constant 0 : index
    %c0_8 = arith.constant 0 : index
    %30 = vector.load %arg3[%c0_7, %c0_8] : memref<16x32xf32, #tpu.memory_space<vmem>>, vector<16x32xf32>
    tpu.vector_store %arg3[%c0_7, %c0_8], %27 {strides = array<i32>} : memref<16x32xf32, #tpu.memory_space<vmem>>, vector<16x32xf32>,
    return
  }
  func.func @transform_0(%arg0: i32) -> (i32, i32) {
    %c0_i32 = arith.constant 0 : i32
    %c0_i32_0 = arith.constant 0 : i32
    return %arg0, %c0_i32 : i32, i32
  }
  func.func @transform_1(%arg0: i32) -> (i32, i32) {
    %c0_i32 = arith.constant 0 : i32
    %c0_i32_0 = arith.constant 0 : i32
    return %arg0, %c0_i32 : i32, i32
  }
  func.func @transform_2(%arg0: i32) -> (i32, i32) {
    %c0_i32 = arith.constant 0 : i32
    %c0_i32_0 = arith.constant 0 : i32
    return %arg0, %c0_i32 : i32, i32
  }
}

</mosaic_0001>

<bundles_post_ra>
// kernel: tpu_custom_call.1
= control target key start
LH: loop header
LB: loop body
LE: loop exit
PB: predicated region body
PF: predicated region fallthrough
CT: control target
= control target key end

     0   :  { %8 = vsyncpa [#allocation3], 0  ;;  %s324_s0 = inlined_call_operand.hbm [shape: f32[16,32], index: 0, kind: input, shape index: {}]   ;;  %s325_s1 = inlined_call_operand.hbm [shape: s8[16,32], index: 1, kind: output, shape index: {0}]   ;;  %s326_s2 = inlined_call_operand.hbm [shape: f32[16,32], index: 2, kind: output, shape index: {1}]  }
   0x1   :  { %9 = vsyncpa [#allocation4], 0 }
   0x2   :  { %10 = vsyncpa [#allocation7], 0  ;;  %s235_s9 = smov [#allocation2]   ;;  %s163_s13 = scalar_lea.hbm %s324_s0, 256 }
   0x3   :  { %s16_s10 = sshll.u32 %s235_s9, 4  ;;  %p164_p0 = scmp.ne.s32.totalorder %s324_s0, %s163_s13  ;;  %s17_s10 = int_to_ptr.vmem [resolvable:$true] %s16_s10 }
   0x4   :  { %p167_p1 = scmp.lt.u32.totalorder %s163_s13, %s324_s0 }
   0x6   :  { %p169_p2 = pnand %p167_p1, %p164_p0 }
   0x8   :  { %172 = shalt.err (!%p169_p2)
}
   0x9   :  { %s173_s18 = scalar_lea.vmem %s17_s10, 256  ;;  %p178_p4 = scmp.lt.s32.totalorder %s17_s10, %s17_s10 }
   0xa   :  { %p174_p3 = scmp.ne.s32.totalorder %s17_s10, %s173_s18  ;;  %p179_p5 = scmp.lt.s32.totalorder %s173_s18, %s173_s18 }
   0xc   :  { %p180_p6 = por %p179_p5, %p178_p4 }
   0xe   :  { %p181_p7 = pnand %p180_p6, %p174_p3 }
  0x10   :  { %184 = shalt.err (!%p181_p7)
}
  0x11   :  { %s236_s19 = smov 128   ;;  %s237_s20 = smov 8  }
  0x12   :  { %22 = dma.hbm_to_vmem [thread:$0]  %s324_s0, 256, %s17_s10, [#allocation3], %s236_s19, %s236_s19, %s237_s20  }
  0x13   :  { %229 = dma.done.wait [#allocation3], 256  }
  0x14   :  { %230 = vsyncadd [#allocation3], 4294967040  ;;  %vm30_vm0 = vcmask 261120   ;;  %v28_v0 = vld [vmem:[#allocation2] sm:$0xff]  ;;  %v274_v1 = vld [vmem:[#allocation2 + $0x8] sm:$0xff]  ;;  %v43_v5 = vlaneseq  ;;  %v238_v43 = vmov 0.0  }
  0x15   :  { %v31_v2 = vsel %vm30_vm0, %v28_v0, -inf  ;;  %v34_v3 = vsel %vm30_vm0, %v274_v1, -inf  ;;  %v37_v4 = vsel %vm30_vm0, %v28_v0, inf  ;;  %v40_v17 = vsel %vm30_vm0, %v274_v1, inf  ;;  %s240_s0 = smov [#allocation6]   ;;  %s241_s24 = smov [#allocation5]  }
  0x16   :  { %32 = vmax.xlane.f32.xlu0 %v31_v2  ;;  %v44_v6 = vand.u32 127, %v43_v5  ;;  %v239_v55 = vmov 0   ;;  %s132_s23 = sshll.u32 %s240_s0, 4  ;;  %s120_s25 = sshll.u32 %s241_s24, 4  ;;  %vm110_vm9 = vcmask 254976   ;;  %s133_s23 = int_to_ptr.vmem [resolvable:$true] %s132_s23  ;;  %s287_s25 = int_to_ptr.vmem [resolvable:$true] %s120_s25 }
  0x17   :  { %s185_s26 = scalar_lea.vmem %s133_s23, 256  ;;  %p190_p9 = scmp.lt.s32.totalorder %s133_s23, %s133_s23 }
  0x18   :  { %p186_p8 = scmp.ne.s32.totalorder %s133_s23, %s185_s26  ;;  %p191_p10 = scmp.lt.s32.totalorder %s185_s26, %s185_s26 }
  0x1a   :  { %35 = vmax.xlane.f32.xlu0 %v34_v3  ;;  %p192_p11 = por %p191_p10, %p190_p9 }
  0x1c   :  { %p193_p12 = pnand %p192_p11, %p186_p8 }
  0x1e   :  { %38 = vmin.xlane.f32.xlu0 %v37_v4 }
  0xa3   :  { %v33_v7 = vpop.xlane.xlu0 %32 }
  0xa4   :  { %vm45_vm1 = vcmp.eq.f32.partialorder %v28_v0, %v33_v7 }
  0xa5   :  { %v47_v8 = vsel %vm45_vm1, %v44_v6, 32 }
  0xa6   :  { %v49_v9 = vsel %vm30_vm0, %v47_v8, 2147483647 }
  0xa7   :  { %v36_v10 = vpop.xlane.xlu0 %35  ;;  %v51_v11 = vshra.s32 %v49_v9, 16  ;;  %v50_v18 = vand.u32 65535, %v49_v9 }
  0xa8   :  { %vm46_vm2 = vcmp.eq.f32.partialorder %v274_v1, %v36_v10 }
  0xa9   :  { %v48_v12 = vsel %vm46_vm2, %v44_v6, 32  ;;  %v53_v13 = vcvt.s32.f32 %v51_v11  ;;  %v52_v20 = vcvt.s32.f32 %v50_v18 }
  0xaa   :  { %v64_v14 = vsel %vm30_vm0, %v48_v12, 2147483647 }
  0xab   :  { %54 = vmin.xlane.f32.xlu1 %v53_v13  ;;  %v66_v15 = vshra.s32 %v64_v14, 16  ;;  %v65_v21 = vand.u32 65535, %v64_v14  ;;  %v39_v26 = vpop.xlane.xlu0 %38 }
  0xac   :  { %v81_v27 = vsub.f32 %v33_v7, %v39_v26  ;;  %v87_v37 = vsub.f32 %v28_v0, %v39_v26 }
  0xad   :  { %v68_v16 = vcvt.s32.f32 %v66_v15  ;;  %v67_v24 = vcvt.s32.f32 %v65_v21 }
  0xae   :  { %v83_v29 = vadd.f32 0.001, %v81_v27 }
  0xaf   :  { %69 = vmin.xlane.f32.xlu1 %v68_v16 }
  0xb0   :  { %159 = vrcp.f32 %v83_v29 }
  0xb3   :  { %41 = vmin.xlane.f32.xlu1 %v40_v17 }
  0xba   :  { %v160_v39 = vpop.eup %159 }
  0xbb   :  { %v89_v45 = vmul.f32 %v160_v39, %v87_v37 }
 0x138   :  { %v55_v19 = vpop.xlane.xlu1 %54 }
 0x139   :  { %vm56_vm3 = vcmp.eq.f32.partialorder %v53_v13, %v55_v19  ;;  %v61_v32 = vcvt.f32.s32 %v55_v19 }
 0x13a   :  { %v57_v22 = vsel %vm56_vm3, %v52_v20, inf }
 0x13b   :  { %58 = vmin.xlane.f32.xlu0 %v57_v22  ;;  %v62_v34 = vshll.u32 %v61_v32, 16 }
 0x13c   :  { %v70_v23 = vpop.xlane.xlu1 %69 }
 0x13d   :  { %vm71_vm4 = vcmp.eq.f32.partialorder %v68_v16, %v70_v23  ;;  %v76_v35 = vcvt.f32.s32 %v70_v23 }
 0x13e   :  { %v72_v25 = vsel %vm71_vm4, %v67_v24, inf }
 0x13f   :  { %73 = vmin.xlane.f32.xlu1 %v72_v25  ;;  %v77_v41 = vshll.u32 %v76_v35, 16 }
 0x140   :  { %v42_v28 = vpop.xlane.xlu1 %41 }
 0x141   :  { %v82_v30 = vsub.f32 %v36_v10, %v42_v28  ;;  %v88_v46 = vsub.f32 %v274_v1, %v42_v28 }
 0x143   :  { %v84_v31 = vadd.f32 0.001, %v82_v30 }
 0x145   :  { %161 = vrcp.f32 %v84_v31 }
 0x14f   :  { %v162_v49 = vpop.eup %161 }
 0x150   :  { %v90_v52 = vmul.f32 %v162_v49, %v88_v46 }
 0x1c8   :  { %v59_v33 = vpop.xlane.xlu0 %58 }
 0x1c9   :  { %v60_v36 = vcvt.f32.s32 %v59_v33 }
 0x1cb   :  { %v63_v38 = vadd.s32 %v62_v34, %v60_v36 }
 0x1cc   :  { %v74_v40 = vpop.xlane.xlu1 %73 }
 0x1cd   :  { %vm79_vm5 = vcmp.eq.s32.totalorder %v44_v6, %v63_v38  ;;  %v75_v42 = vcvt.f32.s32 %v74_v40 }
 0x1ce   :  { %v148_v44 = vsel %vm79_vm5, 1.0, %v238_v43 }
 0x1cf   :  { %v95_v47 = vsub.f32 1.0, %v148_v44  ;;  %v78_v48 = vadd.s32 %v77_v41, %v75_v42 }
 0x1d1   :  { %v97_v50 = vsub.f32 %v95_v47, %v89_v45  ;;  %vm80_vm6 = vcmp.eq.s32.totalorder %v44_v6, %v78_v48 }
 0x1d2   :  { %v149_v51 = vsel %vm80_vm6, 1.0, %v238_v43  ;;  %vm101_vm7 = vmpackc.low %vm80_vm6, %vm79_vm5 }
 0x1d3   :  { %v99_v53 = vand.u32 2147483647, %v97_v50  ;;  %v96_v54 = vsub.f32 1.0, %v149_v51  ;;  %vm102_vm8 = vmpackc.even %vm101_vm7, %vm101_vm7 }
 0x1d4   :  { %v103_v56 = vsel %vm102_vm8, 16843009, %v239_v55 }
 0x1d5   :  { %113 = vst.msk [vmem:[#allocation6] sm:$0xff] %vm30_vm0, %v99_v53  ;;  %v98_v57 = vsub.f32 %v96_v54, %v90_v52  ;;  %v104_v58 = vunpack.c.0.s8 %v103_v56  ;;  %v105_v59 = vunpack.c.1.s8 %v103_v56 }
 0x1d7   :  { %v100_v60 = vand.u32 2147483647, %v98_v57  ;;  %v106_v61 = vpack.c.b16 %v104_v58, %v104_v58  ;;  %v108_v62 = vpack.c.b16 %v105_v59, %v105_v59 }
 0x1d9   :  { %v107_v63 = vpack.c.b8 %v106_v61, %v106_v61  ;;  %v109_v0 = vpack.c.b8 %v108_v62, %v108_v62  ;;  %114 = vst.msk [vmem:[#allocation6 + $0x8] sm:$0xff] %vm30_vm0, %v100_v60 }
 0x1da   :  { %196 = shalt.err (!%p193_p12)
}
 0x1db   :  { %s197_s29 = scalar_lea.hbm %s326_s2, 256 }
 0x1dc   :  { %p198_p13 = scmp.ne.s32.totalorder %s326_s2, %s197_s29  ;;  %p201_p0 = scmp.lt.u32.totalorder %s197_s29, %s326_s2 }
 0x1de   :  { %p203_p1 = pnand %p201_p0, %p198_p13 }
 0x1e0   :  { %206 = shalt.err (!%p203_p1)
}
 0x1e1   :  { %138 = dma.vmem_to_hbm [thread:$0]  %s133_s23, 256, %s326_s2, [#allocation7], %s236_s19, %s236_s19, %s237_s20   ;;  %111 = vst.msk [vmem:[#allocation5] sm:$0x3] %vm110_vm9, %v107_v63  ;;  %112 = vst.msk [vmem:[#allocation5 + $0x2] sm:$0x3] %vm110_vm9, %v109_v0 }
 0x1e2   :  { %s207_s8 = scalar_lea.vmem %s287_s25, 64  ;;  %p212_p3 = scmp.lt.s32.totalorder %s287_s25, %s287_s25 }
 0x1e3   :  { %p208_p2 = scmp.ne.s32.totalorder %s287_s25, %s207_s8  ;;  %p213_p4 = scmp.lt.s32.totalorder %s207_s8, %s207_s8 }
 0x1e5   :  { %p214_p5 = por %p213_p4, %p212_p3 }
 0x1e7   :  { %p215_p6 = pnand %p214_p5, %p208_p2 }
 0x1e9   :  { %218 = shalt.err (!%p215_p6)
}
 0x1ea   :  { %s219_s11 = scalar_lea.hbm %s325_s1, 64 }
 0x1eb   :  { %p220_p7 = scmp.ne.s32.totalorder %s325_s1, %s219_s11  ;;  %p223_p8 = scmp.lt.u32.totalorder %s219_s11, %s325_s1 }
 0x1ed   :  { %p225_p9 = pnand %p223_p8, %p220_p7 }
 0x1ef   :  { %228 = shalt.err (!%p225_p9)
}
 0x1f0   :  { %s242_s15 = smov 32   ;;  %s243_s16 = smov 2  }
 0x1f1   :  { %126 = dma.vmem_to_hbm [thread:$0]  %s287_s25, 64, %s325_s1, [#allocation4], %s242_s15, %s242_s15, %s243_s16  }
 0x1f2   :  { %231 = dma.done.wait [#allocation4], 64  }
 0x1f3   :  { %232 = vsyncadd [#allocation4], 4294967232 }
 0x1f4   :  { %233 = dma.done.wait [#allocation7], 256  }
 0x1f5   :  { %234 = vsyncadd [#allocation7], 4294967040 }
 0x1f6   :  { %145 = vsyncpa [#allocation3], 1 }
 0x1f7   :  { %146 = vsyncpa [#allocation4], 1 }
 0x1f8   :  { %147 = vsyncpa [#allocation7], 1 }

</bundles_post_ra>
